<compile_context>
chip_gen: v5e
topology: v5e:2x2
jax: 0.10.0
libtpu: 0.0.40
codegen_flags: <defaults>
</compile_context>

<pallas_src>
import functools

import jax
import jax.numpy as jnp
from jax.experimental import pallas as pl
from jax.experimental.pallas import tpu as pltpu

_MIB = 1024 * 1024


def _round_up(x, m):
    return ((x + m - 1) // m) * m


def _tpu_generation():
    """Best-effort TPU generation from device_kind; None if unknown."""
    try:
        kind = jax.devices()[0].device_kind.lower()
    except Exception:
        return None
    for tag, gen in (("v7", 7), ("7x", 7), ("v6", 6), ("v5", 5), ("v4", 4),
                     ("v3", 3), ("v2", 2)):
        if tag in kind:
            return gen
    return None


def _int_pow(x, n):
    """x**n for a static positive integer n via exponentiation by squaring.

    Unrolled at trace time -> pure VPU multiplies (no EUP transcendentals).
    """
    assert n >= 1
    acc = None
    base = x
    while n > 0:
        if n & 1:
            acc = base if acc is None else acc * base
        n >>= 1
        if n:
            base = base * base
    return acc


def _gem_kernel_static_p(x_ref, o_ref, *, p, eps, bf16_elementwise):
    """GeM over one (TR, HW) row tile; p is a static Python float.

    Note: the padded tail rows of the last tile read uninitialized VMEM; any
    NaN/Inf they produce stays in rows that Pallas masks out of the partial
    output-block writeback, so it is harmless.
    """
    p_f = float(p)
    x = x_ref[...]
    if p_f.is_integer() and 1.0 <= p_f <= 16.0:
        # Fast path (GeM default p=3): multiplies only.
        if bf16_elementwise and x.dtype == jnp.bfloat16:
            # bf16-native clamp + pow on v6e/v7x VALUs; accumulate in f32.
            xc = jnp.maximum(x, jnp.asarray(eps, dtype=x.dtype))
            xp = _int_pow(xc, int(p_f)).astype(jnp.float32)
        else:
            xc = jnp.maximum(x.astype(jnp.float32), eps)
            xp = _int_pow(xc, int(p_f))
    else:
        # x >= eps > 0, so exp(p*log(x)) is a safe general pow (EUP-bound).
        xc = jnp.maximum(x.astype(jnp.float32), eps)
        xp = jnp.exp(p_f * jnp.log(xc))
    m = jnp.mean(xp, axis=-1, keepdims=True)           # (TR, 1) f32
    r = jnp.exp(jnp.log(m) * (1.0 / p_f))               # m ** (1/p), per row only
    o_ref[...] = r.astype(o_ref.dtype)


def _gem_kernel_dynamic_p(p_ref, x_ref, o_ref, *, eps):
    """GeM over one (TR, HW) row tile; p is a runtime scalar held in SMEM.

    Fallback path (learnable p): 2 transcendentals per element on the single
    EUP slot, further multiplied by lane padding (pad(HW)/HW) for tiny maps.
    """
    p = p_ref[0]
    inv_p = 1.0 / p                                      # hoisted once per tile
    x = jnp.maximum(x_ref[...].astype(jnp.float32), eps)
    xp = jnp.exp(p * jnp.log(x))                         # general pow, x > 0
    m = jnp.mean(xp, axis=-1, keepdims=True)
    r = jnp.exp(jnp.log(m) * inv_p)
    o_ref[...] = r.astype(o_ref.dtype)


def _choose_row_tile(R, HW, itemsize, generation):
    """Rows per tile, sized against a generation-aware VMEM budget.

    Budget covers the full pipelined footprint: 2x input buffer
    (TR x pad(HW) x itemsize, lane-padded to 128) plus 2x output buffer
    (a (TR,1) f32 block is lane-padded to (TR,128) -> 512 B per row).
    """
    pad_hw = max(128, _round_up(HW, 128))
    packing = 8 * max(1, 4 // int(itemsize))      # 8 f32 / 16 bf16 / 32 int8
    r_pad = _round_up(R, packing)

    if generation == 7:
        total_budget = 24 * _MIB                  # 64 MiB physical VMEM per TC
    elif generation in (4, 5, 6):
        total_budget = 36 * _MIB                  # 128 MiB physical VMEM
    elif generation in (2, 3):
        total_budget = 6 * _MIB
    else:
        total_budget = 20 * _MIB                  # unknown chip: conservative

    per_row = 2 * pad_hw * int(itemsize) + 2 * 512
    tr = total_budget // per_row
    # Soft cap (8x the old 1024 cap): keeps the (TR,1) column writeback and
    # unrolled code size sane while still amortizing the ~0.35us step overhead.
    tr = min(tr, 8192)

    # 2-TensorCore chips: make sure "parallel" has at least 2 tiles to hand out.
    if (generation is None or generation >= 7) and r_pad >= 2 * packing:
        tr = min(tr, _round_up(-(-r_pad // 2), packing))

    tr = min(tr, r_pad)
    tr = max(packing, (tr // packing) * packing)
    return int(tr), int(pad_hw)


def _vmem_limit_bytes(tr, pad_hw, itemsize):
    tile = 2 * tr * pad_hw * int(itemsize) + 2 * tr * 512
    # +4 MiB headroom for Mosaic internal scratch / semaphores / misc.
    return int(min(max(tile + 4 * _MIB, 16 * _MIB), 100 * _MIB))


def gem_pool(x, p=3.0, eps=1e-6):
    """GeM pooling matching GeM.forward: clamp(eps) -> ^p -> spatial mean -> ^(1/p).

    x: (N, C, H, W) array (any float dtype; read in native dtype).
    p: Python float (static; enables the integer fast path) or a scalar jnp
       array (runtime p, e.g. a learnable parameter).
    Returns (N, C, 1, 1) in x.dtype.
    """
    N, C, H, W = x.shape
    R, HW = N * C, H * W
    x2d = x.reshape(R, HW)                        # native dtype: HBM-read bound

    itemsize = jnp.dtype(x.dtype).itemsize
    gen = _tpu_generation()
    TR, pad_hw = _choose_row_tile(R, HW, itemsize, gen)
    num_tiles = pl.cdiv(R, TR)

    static_p = isinstance(p, (int, float))
    int_fast_path = static_p and float(p).is_integer() and 1.0 <= float(p) <= 16.0
    bf16_elementwise = (gen in (6, 7)) and x.dtype == jnp.bfloat16 and int_fast_path

    # Advisory cost hint for XLA scheduling around the custom call.
    transcendentals = 2 * R if int_fast_path else (2 * R * HW + 2 * R)
    cost = pl.CostEstimate(
        flops=int(6 * R * HW),
        transcendentals=int(transcendentals),
        bytes_accessed=int(R * HW * itemsize + R * 4),
    )

    cparams = pltpu.CompilerParams(
        dimension_semantics=("parallel",),
        vmem_limit_bytes=_vmem_limit_bytes(TR, pad_hw, itemsize),
    )
    x_spec = pl.BlockSpec((TR, HW), lambda i: (i, 0))
    out_spec = pl.BlockSpec((TR, 1), lambda i: (i, 0))
    out_shape = jax.ShapeDtypeStruct((R, 1), jnp.float32)

    if static_p:
        kern = functools.partial(
            _gem_kernel_static_p, p=float(p), eps=float(eps),
            bf16_elementwise=bf16_elementwise)
        out2d = pl.pallas_call(
            kern,
            out_shape=out_shape,
            grid=(num_tiles,),
            in_specs=[x_spec],
            out_specs=out_spec,
            compiler_params=cparams,
            cost_estimate=cost,
        )(x2d)
    else:
        p_arr = jnp.asarray(p, dtype=jnp.float32).reshape((1,))
        kern = functools.partial(_gem_kernel_dynamic_p, eps=float(eps))
        out2d = pl.pallas_call(
            kern,
            out_shape=out_shape,
            grid=(num_tiles,),
            in_specs=[pl.BlockSpec(memory_space=pltpu.MemorySpace.SMEM), x_spec],
            out_specs=out_spec,
            compiler_params=cparams,
            cost_estimate=cost,
        )(p_arr, x2d)

    return out2d.reshape(N, C, 1, 1).astype(x.dtype)


def gem_reference(x, p, eps=1e-6):
    xf = jnp.maximum(x.astype(jnp.float32), eps)
    xf = xf ** p
    m = jnp.mean(xf, axis=(-2, -1), keepdims=True)
    return m ** (1.0 / p)


if __name__ == "__main__":
    key = jax.random.PRNGKey(0)
    N, C, H, W = 2, 4, 16, 16
    x = jax.random.normal(key, (N, C, H, W), dtype=jnp.float32)

    p = 3.0        # GeM default (requires_grad=False)
    eps = 1e-6
    ref = gem_reference(x, p, eps)

    # 1) Static integer-p fast path (default GeM config).
    out = gem_pool(x, p, eps)
    jax.block_until_ready(out)
    assert out.shape == (N, C, 1, 1)
    assert jnp.allclose(out, ref, rtol=1e-4, atol=1e-5), (
        f"int-p path max abs err {jnp.max(jnp.abs(out - ref))}")

    # 2) Runtime (array) p, as if p were a learnable parameter (EUP fallback).
    out_dyn = gem_pool(x, jnp.asarray(p, dtype=jnp.float32), eps)
    jax.block_until_ready(out_dyn)
    assert jnp.allclose(out_dyn, ref, rtol=1e-3, atol=1e-5), (
        f"dynamic-p path max abs err {jnp.max(jnp.abs(out_dyn - ref))}")

    # 3) Static non-integer p (general exp/log path).
    out_frac = gem_pool(x, 2.5, eps)
    jax.block_until_ready(out_frac)
    ref_frac = gem_reference(x, 2.5, eps)
    assert jnp.allclose(out_frac, ref_frac, rtol=1e-3, atol=1e-5), (
        f"frac-p path max abs err {jnp.max(jnp.abs(out_frac - ref_frac))}")

    # 4) bf16 input: read natively (half HBM bytes); on v6e/v7x the elementwise
    #    work stays in bf16 with f32 accumulation.
    out_bf16 = gem_pool(x.astype(jnp.bfloat16), p, eps)
    jax.block_until_ready(out_bf16)
    assert out_bf16.dtype == jnp.bfloat16
    assert jnp.allclose(out_bf16.astype(jnp.float32), ref, rtol=1e-1, atol=1e-3)

    print("KERNEL_OK")
</pallas_src>

<mosaic_0001>
module attributes {stable_mosaic.version = 11 : i64} {
  func.func @_gem_kernel_static_p(%arg0: i32, %arg1: memref<8x256xf32, #tpu.memory_space<vmem>>, %arg2: memref<8x1xf32, #tpu.memory_space<vmem>>) attributes {dimension_semantics = [#tpu.dimension_semantics<parallel>], iteration_bounds = array<i64: 1>, scalar_prefetch = 0 : i64, scratch_operands = 0 : i64, tpu.core_type = #tpu.core_type<tc>, window_params = [{transform_indices = @transform_0, window_bounds = array<i64: 8, 256>}, {transform_indices = @transform_1, window_bounds = array<i64: 8, 1>}]} {
    %c0 = arith.constant 0 : index
    %c0_0 = arith.constant 0 : index
    %0 = vector.load %arg1[%c0, %c0_0] : memref<8x256xf32, #tpu.memory_space<vmem>>, vector<8x256xf32>
    %cst = arith.constant 9.99999997E-7 : f32
    %1 = vector.broadcast %cst : f32 to vector<8x256xf32>
    %2 = arith.maximumf %0, %1 : vector<8x256xf32>
    %3 = arith.mulf %2, %2 : vector<8x256xf32>
    %4 = arith.mulf %2, %3 : vector<8x256xf32>
    %cst_1 = arith.constant dense<0.000000e+00> : vector<8xf32>
    %5 = vector.multi_reduction <add>, %4, %cst_1 [1] : vector<8x256xf32> to vector<8xf32>
    %6 = vector.shape_cast %5 : vector<8xf32> to vector<8x1xf32>
    %cst_2 = arith.constant 2.560000e+02 : f32
    %7 = vector.broadcast %cst_2 : f32 to vector<8x1xf32>
    %8 = arith.divf %6, %7 : vector<8x1xf32>
    %9 = math.log %8 : vector<8x1xf32>
    %cst_3 = arith.constant 0.333333343 : f32
    %10 = vector.broadcast %cst_3 : f32 to vector<8x1xf32>
    %11 = arith.mulf %9, %10 : vector<8x1xf32>
    %12 = math.exp %11 : vector<8x1xf32>
    %c0_4 = arith.constant 0 : index
    %c0_5 = arith.constant 0 : index
    %13 = vector.load %arg2[%c0_4, %c0_5] : memref<8x1xf32, #tpu.memory_space<vmem>>, vector<8x1xf32>
    tpu.vector_store %arg2[%c0_4, %c0_5], %12 {strides = array<i32>} : memref<8x1xf32, #tpu.memory_space<vmem>>, vector<8x1xf32>,
    return
  }
  func.func @transform_0(%arg0: i32) -> (i32, i32) {
    %c0_i32 = arith.constant 0 : i32
    %c0_i32_0 = arith.constant 0 : i32
    return %arg0, %c0_i32 : i32, i32
  }
  func.func @transform_1(%arg0: i32) -> (i32, i32) {
    %c0_i32 = arith.constant 0 : i32
    %c0_i32_0 = arith.constant 0 : i32
    return %arg0, %c0_i32 : i32, i32
  }
}

</mosaic_0001>

<bundles_post_ra>
// kernel: tpu_custom_call.1
= control target key start
LH: loop header
LB: loop body
LE: loop exit
PB: predicated region body
PF: predicated region fallthrough
CT: control target
= control target key end

     0   :  { %6 = vsyncpa [#allocation3], 0  ;;  %s87_s9 = smov [#allocation2]   ;;  %s105_s0 = inlined_call_operand.hbm [shape: f32[8,256], index: 0, kind: input, shape index: {}]   ;;  %s106_s1 = inlined_call_operand.vmem [shape: f32[8,1], index: 1, kind: output, shape index: {}]  }
   0x1   :  { %s12_s8 = sshll.u32 %s105_s0, 4  ;;  %s14_s10 = sshll.u32 %s87_s9, 4  ;;  %s13_s8 = int_to_ptr.hbm [resolvable:$true] %s12_s8  ;;  %s15_s10 = int_to_ptr.vmem [resolvable:$true] %s14_s10 }
   0x2   :  { %17 = dma.hbm_to_vmem [thread:$0]  %s13_s8, 256, %s15_s10, [#allocation3]  }
   0x3   :  { %85 = dma.done.wait [#allocation3], 256  }
   0x4   :  { %86 = vsyncadd [#allocation3], 4294967040  ;;  %v22_v0 = vld [vmem:[#allocation2] sm:$0xff]  ;;  %v23_v1 = vld [vmem:[#allocation2 + $0x8] sm:$0xff]  ;;  %v88_v9 = vmov 256.0   ;;  %vm46_vm1 = vcmask 7168  }
   0x5   :  { %v24_v2 = vmax.f32 %v22_v0, 1e-06  ;;  %v25_v3 = vmax.f32 %v23_v1, 1e-06  ;;  %55 = vrcp.f32 %v88_v9 }
   0x7   :  { %v26_v4 = vmul.f32 %v24_v2, %v24_v2  ;;  %v27_v5 = vmul.f32 %v25_v3, %v25_v3 }
   0x9   :  { %v28_v6 = vmul.f32 %v26_v4, %v24_v2  ;;  %v29_v7 = vmul.f32 %v27_v5, %v25_v3 }
   0xb   :  { %v30_v8 = vadd.f32 %v29_v7, %v28_v6  ;;  %v56_v10 = vpop.eup %55 }
   0xc   :  { %v34_v11 = vmul.f32 256.0, %v56_v10  ;;  %vm38_vm0 = vweird.f32 %v56_v10 }
   0xd   :  { %31 = vadd.xlane.f32.xlu0 %v30_v8 }
   0xe   :  { %v35_v12 = vsub.f32 1.0, %v34_v11 }
  0x10   :  { %v36_v13 = vmul.f32 %v56_v10, %v35_v12 }
  0x12   :  { %v37_v14 = vadd.f32 %v56_v10, %v36_v13 }
  0x14   :  { %v39_v15 = vsel %vm38_vm0, %v56_v10, %v37_v14 }
  0x80   :  { %v32_v16 = vpop.xlane.xlu0 %31 }
  0x81   :  { %v40_v17 = vmul.f32 %v39_v15, %v32_v16 }
  0x83   :  { %57 = vlog2.f32 %v40_v17 }
  0x89   :  { %v58_v18 = vpop.eup %57 }
  0x8a   :  { %v42_v19 = vmul.f32 0.6931472, %v58_v18 }
  0x8c   :  { %v43_v20 = vmul.f32 0.33333334, %v42_v19 }
  0x8e   :  { %v44_v21 = vmul.f32 1.442695, %v43_v20 }
  0x90   :  { %59 = vpow2.f32 %v44_v21 }
  0x96   :  { %v60_v22 = vpop.eup %59 }
  0x97   :  { %47 = vst.msk [vmem:[%s106_s1] sm:$0xff] %vm46_vm1, %v60_v22 }
  0x98   :  { %52 = vsyncpa [#allocation3], 1 }

</bundles_post_ra>
